<compile_context>
chip_gen: v7x
topology: tpu7x:2x2x1
jax: 0.10.0
libtpu: 0.0.40
codegen_flags: <defaults>
</compile_context>

<pallas_src>
import jax
import jax.numpy as jnp
from jax.experimental import pallas as pl
from jax.experimental.pallas import tpu as pltpu


LANE = 128


# ----------------------------------------------------------------------------
# Pallas kernel: one (batch element, item tile) step.
# ----------------------------------------------------------------------------
def dfm_kernel(item_ref, exh_ref, w4sex_ref,
               w1_ref, w2_ref, b2_ref, w3_ref, b3_ref,
               out_ref):
    """Compute deep-MLP term + FM dot for a tile of items of one batch row.

    item_ref  : (1, E, tn)    bf16  item embeddings, items on the lane axis
    exh_ref   : (1, H1, 1)    f32   [u|o|t] @ W1_ex' + b1'  (shared layer-1 term)
    w4sex_ref : (1, 1, H3+E)  bf16  [w4' | (u+o+t)]  (merged output row)
    w1_ref    : (H1, E)       bf16  item part of layer-1 weight (BN folded)
    w2_ref    : (H2, H1) bf16   b2_ref : (H2, 1) f32
    w3_ref    : (H3, H2) bf16   b3_ref : (H3, 1) f32
    out_ref   : (1, 1, tn)    f32   deep + fm_dot (bias / fm_const / b4 added in wrapper)
    """
    x = item_ref[0]                                                  # (E, tn) bf16

    # ---- deep MLP, transposed: h is (hidden, tn), lane-dense over items ----
    h = jnp.dot(w1_ref[...], x, preferred_element_type=jnp.float32)
    h = jnp.maximum(h + exh_ref[0], 0.0)                             # (H1, tn)

    h = jnp.dot(w2_ref[...], h.astype(jnp.bfloat16),
                preferred_element_type=jnp.float32)
    h = jnp.maximum(h + b2_ref[...], 0.0)                            # (H2, tn)

    h = jnp.dot(w3_ref[...], h.astype(jnp.bfloat16),
                preferred_element_type=jnp.float32)
    h = jnp.maximum(h + b3_ref[...], 0.0)                            # (H3, tn)

    # ---- merged output row: w4 @ h + s_ex . x  in a single M=1 matmul ------
    hx = jnp.concatenate([h.astype(jnp.bfloat16), x], axis=0)        # (H3+E, tn)
    out = jnp.dot(w4sex_ref[0], hx, preferred_element_type=jnp.float32)  # (1, tn)
    out_ref[...] = out[None]


def dfm_forward_pallas(item_T, ex_h1c, w4sex, kp, *, tn):
    """item_T: (B, E, n_pad) bf16 -> (B, 1, n_pad) f32 = deep + fm_dot."""
    B, E, n_pad = item_T.shape
    H1 = kp["w1_item_T"].shape[0]
    H2 = kp["w2_T"].shape[0]
    H3 = kp["w3_T"].shape[0]
    assert n_pad % tn == 0

    full = lambda shape: pl.BlockSpec(shape, lambda b, j: (0, 0))

    grid_spec = pltpu.PrefetchScalarGridSpec(
        num_scalar_prefetch=0,
        grid=(B, n_pad // tn),
        in_specs=[
            pl.BlockSpec((1, E, tn), lambda b, j: (b, 0, j)),        # item embeddings (bf16)
            pl.BlockSpec((1, H1, 1), lambda b, j: (b, 0, 0)),        # shared layer-1 term
            pl.BlockSpec((1, 1, H3 + E), lambda b, j: (b, 0, 0)),    # [w4 | u+o+t] row
            full((H1, E)),                                           # w1_item_T (bf16)
            full((H2, H1)), full((H2, 1)),                           # w2_T, b2_col
            full((H3, H2)), full((H3, 1)),                           # w3_T, b3_col
        ],
        out_specs=pl.BlockSpec((1, 1, tn), lambda b, j: (b, 0, j)),
    )

    return pl.pallas_call(
        dfm_kernel,
        out_shape=jax.ShapeDtypeStruct((B, 1, n_pad), jnp.float32),
        grid_spec=grid_spec,
        compiler_params=pltpu.CompilerParams(
            dimension_semantics=("parallel", "parallel")),
    )(item_T, ex_h1c, w4sex,
      kp["w1_item_T"], kp["w2_T"], kp["b2_col"], kp["w3_T"], kp["b3_col"])


def _choose_item_tile(n, batch, cap=2048):
    """Pick the item tile: pad N up to a multiple of 128, choose the number of
    item-tile steps from a cap of ~2048 lanes per step, keep at least 2 total
    grid steps (for v7x megacore), then pad N up to steps * tn."""
    n_pad = ((n + LANE - 1) // LANE) * LANE
    steps = max(1, (n_pad + cap - 1) // cap)
    if batch * steps < 2 and n_pad >= 2 * LANE:
        steps = 2
    tn = (((n_pad + steps - 1) // steps + LANE - 1) // LANE) * LANE
    n_pad = steps * tn
    return n_pad, tn


# ----------------------------------------------------------------------------
# Parameters (same construction as the PyTorch module, eval-mode BN folded)
# ----------------------------------------------------------------------------
def _fold_and_transpose(mlp_params, E):
    (w1, b1, s1, t1, w2, b2, s2, t2, w3, b3, s3, t3, w4, b4) = mlp_params
    # fold eval-mode BatchNorm scale/shift into the preceding linear layer
    w1f = w1 * s1; b1f = b1 * s1 + t1
    w2f = w2 * s2; b2f = b2 * s2 + t2
    w3f = w3 * s3; b3f = b3 * s3 + t3
    return dict(
        # streamed into the kernel (bf16 matmul operands / f32 column biases)
        w1_item_T=jnp.asarray(w1f[:E].T, jnp.bfloat16),   # (H1, E)
        w2_T=jnp.asarray(w2f.T, jnp.bfloat16),            # (H2, H1)
        b2_col=jnp.asarray(b2f.T, jnp.float32),           # (H2, 1)
        w3_T=jnp.asarray(w3f.T, jnp.bfloat16),            # (H3, H2)
        b3_col=jnp.asarray(b3f.T, jnp.float32),           # (H3, 1)
        w4_T=jnp.asarray(w4.T, jnp.bfloat16),              # (1, H3)
        # used in the JAX wrapper (per-batch precompute / final add)
        w1_ex=jnp.asarray(w1f[E:], jnp.float32),           # (3E, H1)
        b1=jnp.asarray(b1f, jnp.float32),                  # (1, H1)
        b4=jnp.asarray(b4, jnp.float32),                   # (1, 1)
    )


class DeepFMParams:
    def __init__(self, key, n_users, n_items, n_occupations, max_ts_rank,
                 embedding_dim):
        self.n_users = n_users
        self.n_items = n_items
        self.n_occupations = n_occupations
        self.max_ts_rank = max_ts_rank
        self.E = embedding_dim
        n_features = n_users + n_items + n_occupations + max_ts_rank
        self.n_features = n_features

        ks = jax.random.split(key, 16)
        E = embedding_dim
        # embeddings (nn.Embedding default ~ N(0, 1))
        self.feature_embedding = jax.random.normal(ks[0], (n_features, E), jnp.float32)
        self.bias_embedding = jax.random.normal(ks[1], (n_features, 1), jnp.float32)

        # MLP: Linear(4E,4E)+BN, Linear(4E,2E)+BN, Linear(2E,E)+BN, Linear(E,1)
        dims = [(4 * E, 4 * E), (4 * E, 2 * E), (2 * E, E), (E, 1)]
        eps = 1e-5
        packed = []
        k_i = 2
        for li, (din, dout) in enumerate(dims):
            w = jax.random.normal(ks[k_i], (din, dout), jnp.float32) * 0.05
            b = jax.random.normal(ks[k_i + 1], (1, dout), jnp.float32) * 0.05
            k_i += 2
            packed.append(w)
            packed.append(b)
            if li < 3:
                gamma = 1.0 + 0.1 * jax.random.normal(ks[k_i], (1, dout), jnp.float32)
                beta = 0.1 * jax.random.normal(ks[k_i + 1], (1, dout), jnp.float32)
                k_i += 2
                run_mean = jnp.zeros((1, dout), jnp.float32)
                run_var = jnp.ones((1, dout), jnp.float32)
                scale = gamma / jnp.sqrt(run_var + eps)
                shift = beta - run_mean * scale
                packed.append(scale)
                packed.append(shift)
        self.mlp_params = tuple(packed)  # (w1,b1,s1,t1, w2,b2,s2,t2, w3,b3,s3,t3, w4,b4)
        self.kernel_params = _fold_and_transpose(self.mlp_params, E)


# ----------------------------------------------------------------------------
# Model wrapper (glue in plain JAX: index arithmetic, gathers, per-batch terms)
# ----------------------------------------------------------------------------
def deep_fm_forward(params: DeepFMParams, inputs):
    users = inputs["user_code"]                 # (B,)   int32
    items = inputs["item_code"]                 # (B, N) int32
    occupations = inputs["user_occupation"]     # (B,)   int32
    ts_rank = inputs["item_timestamp_rank"]     # (B,)   int32

    B, N = items.shape
    E = params.E

    user_idx = users
    item_idx = items + params.n_users
    occ_idx = occupations + params.n_users + params.n_items
    ts_idx = ts_rank + params.n_users + params.n_items + params.n_occupations

    fe = params.feature_embedding
    be = params.bias_embedding

    # ---- first-order bias term (added after the kernel) --------------------
    item_bias = jnp.take(be, item_idx, axis=0)[..., 0]          # (B, N)
    ex_bias = (jnp.take(be, user_idx, axis=0)
               + jnp.take(be, occ_idx, axis=0)
               + jnp.take(be, ts_idx, axis=0))                  # (B, 1)
    bias_term = ex_bias + item_bias                             # (B, N)

    # ---- embedding gathers --------------------------------------------------
    item_fe = jnp.take(fe, item_idx, axis=0)                    # (B, N, E)
    u_fe = jnp.take(fe, user_idx, axis=0)                       # (B, E)
    o_fe = jnp.take(fe, occ_idx, axis=0)                        # (B, E)
    t_fe = jnp.take(fe, ts_idx, axis=0)                         # (B, E)

    # ---- FM:  fm(b, n) = fm_const(b) + item_fe(b, n, :) . (u+o+t)(b, :) -----
    s_ex = u_fe + o_fe + t_fe                                   # (B, E)
    fm_const = 0.5 * jnp.sum(s_ex * s_ex - u_fe * u_fe - o_fe * o_fe
                             - t_fe * t_fe, axis=-1)            # (B,)

    # ---- shared (per-batch) part of the first MLP layer ---------------------
    kp = params.kernel_params
    ex_flat = jnp.concatenate([u_fe, o_fe, t_fe], axis=-1)      # (B, 3E)
    ex_h1 = ex_flat @ kp["w1_ex"] + kp["b1"]                    # (B, H1) f32

    # ---- merged output row for the kernel: [w4' | s_ex]  (bf16) -------------
    H3 = kp["w3_T"].shape[0]
    w4sex = jnp.concatenate(
        [jnp.broadcast_to(kp["w4_T"][None], (B, 1, H3)),
         s_ex[:, None, :].astype(jnp.bfloat16)], axis=-1)       # (B, 1, H3+E)

    # ---- lane-dense kernel inputs: items on the lane axis, bf16, padded -----
    n_pad, tn = _choose_item_tile(N, B)
    item_T = jnp.swapaxes(item_fe.astype(jnp.bfloat16), 1, 2)   # (B, E, N) bf16
    if n_pad != N:
        item_T = jnp.pad(item_T, ((0, 0), (0, 0), (0, n_pad - N)))

    out = dfm_forward_pallas(item_T,
                             ex_h1[:, :, None].astype(jnp.float32),
                             w4sex,
                             kp, tn=tn)                         # (B, 1, n_pad)

    deep_plus_fmdot = out[:, 0, :N]                             # (B, N)
    logits = deep_plus_fmdot + bias_term + fm_const[:, None] + kp["b4"]
    return logits


# pure-JAX reference (same math as the PyTorch module, no Pallas, all f32)
def deep_fm_reference(params: DeepFMParams, inputs):
    users = inputs["user_code"]
    items = inputs["item_code"]
    occupations = inputs["user_occupation"]
    ts_rank = inputs["item_timestamp_rank"]
    B, N = items.shape
    E = params.E

    user_idx = users
    item_idx = items + params.n_users
    occ_idx = occupations + params.n_users + params.n_items
    ts_idx = ts_rank + params.n_users + params.n_items + params.n_occupations

    fe, be = params.feature_embedding, params.bias_embedding
    item_bias = jnp.take(be, item_idx, axis=0)[..., 0]
    ex_bias = jnp.take(be, jnp.stack([user_idx, occ_idx, ts_idx], axis=1), axis=0).sum(axis=1)
    bias_term = ex_bias + item_bias

    item_fe = jnp.take(fe, item_idx, axis=0)
    ex_fe = jnp.take(fe, jnp.stack([user_idx, occ_idx, ts_idx], axis=1), axis=0)  # (B,3,E)
    square_of_sum = (ex_fe.sum(axis=1, keepdims=True) + item_fe) ** 2
    sum_of_square = (ex_fe ** 2).sum(axis=1, keepdims=True) + item_fe ** 2
    fm_term = 0.5 * (square_of_sum - sum_of_square).sum(axis=-1)

    x = jnp.concatenate(
        [item_fe, jnp.broadcast_to(ex_fe.reshape(B, 1, 3 * E), (B, N, 3 * E))],
        axis=-1).reshape(B * N, 4 * E)
    (w1, b1, s1, t1, w2, b2, s2, t2, w3, b3, s3, t3, w4, b4) = params.mlp_params
    h = jnp.maximum((x @ w1 + b1) * s1 + t1, 0.0)
    h = jnp.maximum((h @ w2 + b2) * s2 + t2, 0.0)
    h = jnp.maximum((h @ w3 + b3) * s3 + t3, 0.0)
    deep = (h @ w4 + b4).reshape(B, N)
    return bias_term + fm_term + deep


if __name__ == "__main__":
    key = jax.random.PRNGKey(0)
    k_param, k_u, k_i, k_o, k_t = jax.random.split(key, 5)

    # small, deterministic config
    n_users, n_items_total, n_occupations, max_ts_rank = 50, 40, 10, 20
    embedding_dim = 32
    B, N = 2, 8  # batch, items per example

    params = DeepFMParams(k_param, n_users, n_items_total, n_occupations,
                          max_ts_rank, embedding_dim)

    inputs = {
        "user_code": jax.random.randint(k_u, (B,), 0, n_users, jnp.int32),
        "item_code": jax.random.randint(k_i, (B, N), 0, n_items_total, jnp.int32),
        "user_occupation": jax.random.randint(k_o, (B,), 0, n_occupations, jnp.int32),
        "item_timestamp_rank": jax.random.randint(k_t, (B,), 0, max_ts_rank, jnp.int32),
    }

    logits = jax.block_until_ready(deep_fm_forward(params, inputs))
    ref = jax.block_until_ready(deep_fm_reference(params, inputs))

    assert logits.shape == (B, N)
    max_diff = jnp.max(jnp.abs(logits - ref))
    # bf16 item-embedding stream + bf16 matmuls (f32 accumulation) -> bf16-level tolerance
    assert jnp.allclose(logits, ref, atol=1e-1, rtol=2e-2), (
        f"mismatch: max abs diff {max_diff}")

    print("KERNEL_OK")
</pallas_src>

<mosaic_0001>
module attributes {stable_mosaic.version = 11 : i64} {
  func.func @dfm_kernel(%arg0: i32, %arg1: i32, %arg2: memref<1x32x128xbf16, #tpu.memory_space<vmem>>, %arg3: memref<1x128x1xf32, #tpu.memory_space<vmem>>, %arg4: memref<1x1x64xbf16, #tpu.memory_space<vmem>>, %arg5: memref<128x32xbf16, #tpu.memory_space<vmem>>, %arg6: memref<64x128xbf16, #tpu.memory_space<vmem>>, %arg7: memref<64x1xf32, #tpu.memory_space<vmem>>, %arg8: memref<32x64xbf16, #tpu.memory_space<vmem>>, %arg9: memref<32x1xf32, #tpu.memory_space<vmem>>, %arg10: memref<1x1x128xf32, #tpu.memory_space<vmem>>) attributes {dimension_semantics = [#tpu.dimension_semantics<parallel>, #tpu.dimension_semantics<parallel>], iteration_bounds = array<i64: 2, 1>, scalar_prefetch = 0 : i64, scratch_operands = 0 : i64, tpu.core_type = #tpu.core_type<tc>, window_params = [{transform_indices = @transform_0, window_bounds = array<i64: 1, 32, 128>}, {transform_indices = @transform_1, window_bounds = array<i64: 1, 128, 1>}, {transform_indices = @transform_2, window_bounds = array<i64: 1, 1, 64>}, {pipeline_mode = #tpu.pipeline_mode<synchronous>, transform_indices = @transform_3, window_bounds = array<i64: 128, 32>}, {pipeline_mode = #tpu.pipeline_mode<synchronous>, transform_indices = @transform_4, window_bounds = array<i64: 64, 128>}, {pipeline_mode = #tpu.pipeline_mode<synchronous>, transform_indices = @transform_5, window_bounds = array<i64: 64, 1>}, {pipeline_mode = #tpu.pipeline_mode<synchronous>, transform_indices = @transform_6, window_bounds = array<i64: 32, 64>}, {pipeline_mode = #tpu.pipeline_mode<synchronous>, transform_indices = @transform_7, window_bounds = array<i64: 32, 1>}, {transform_indices = @transform_8, window_bounds = array<i64: 1, 1, 128>}]} {
    %c0 = arith.constant 0 : index
    %c0_0 = arith.constant 0 : index
    %c0_1 = arith.constant 0 : index
    %0 = vector.load %arg2[%c0, %c0_0, %c0_1] : memref<1x32x128xbf16, #tpu.memory_space<vmem>>, vector<1x32x128xbf16>
    %1 = vector.shape_cast %0 : vector<1x32x128xbf16> to vector<32x128xbf16>
    %c0_2 = arith.constant 0 : index
    %c0_3 = arith.constant 0 : index
    %2 = vector.load %arg5[%c0_2, %c0_3] : memref<128x32xbf16, #tpu.memory_space<vmem>>, vector<128x32xbf16>
    %cst = arith.constant dense<0.000000e+00> : vector<128x128xf32>
    %3 = tpu.matmul %2, %1, %cst {dimension_numbers = #tpu.dot_dimension_numbers<[1], [0], [0], [1], [0, 0, 1, 1], [], []>} : vector<128x32xbf16>, vector<32x128xbf16>, vector<128x128xf32> -> vector<128x128xf32>
    %c0_4 = arith.constant 0 : index
    %c0_5 = arith.constant 0 : index
    %c0_6 = arith.constant 0 : index
    %4 = vector.load %arg3[%c0_4, %c0_5, %c0_6] : memref<1x128x1xf32, #tpu.memory_space<vmem>>, vector<1x128x1xf32>
    %5 = vector.shape_cast %4 : vector<1x128x1xf32> to vector<128x1xf32>
    %6 = vector.broadcast %5 : vector<128x1xf32> to vector<128x128xf32>
    %7 = arith.addf %3, %6 : vector<128x128xf32>
    %cst_7 = arith.constant 0.000000e+00 : f32
    %8 = vector.broadcast %cst_7 : f32 to vector<128x128xf32>
    %9 = arith.maximumf %7, %8 : vector<128x128xf32>
    %c0_8 = arith.constant 0 : index
    %c0_9 = arith.constant 0 : index
    %10 = vector.load %arg6[%c0_8, %c0_9] : memref<64x128xbf16, #tpu.memory_space<vmem>>, vector<64x128xbf16>
    %11 = arith.truncf %9 : vector<128x128xf32> to vector<128x128xbf16>
    %cst_10 = arith.constant dense<0.000000e+00> : vector<64x128xf32>
    %12 = tpu.matmul %10, %11, %cst_10 {dimension_numbers = #tpu.dot_dimension_numbers<[1], [0], [0], [1], [0, 0, 1, 1], [], []>} : vector<64x128xbf16>, vector<128x128xbf16>, vector<64x128xf32> -> vector<64x128xf32>
    %c0_11 = arith.constant 0 : index
    %c0_12 = arith.constant 0 : index
    %13 = vector.load %arg7[%c0_11, %c0_12] : memref<64x1xf32, #tpu.memory_space<vmem>>, vector<64x1xf32>
    %14 = vector.broadcast %13 : vector<64x1xf32> to vector<64x128xf32>
    %15 = arith.addf %12, %14 : vector<64x128xf32>
    %cst_13 = arith.constant 0.000000e+00 : f32
    %16 = vector.broadcast %cst_13 : f32 to vector<64x128xf32>
    %17 = arith.maximumf %15, %16 : vector<64x128xf32>
    %c0_14 = arith.constant 0 : index
    %c0_15 = arith.constant 0 : index
    %18 = vector.load %arg8[%c0_14, %c0_15] : memref<32x64xbf16, #tpu.memory_space<vmem>>, vector<32x64xbf16>
    %19 = arith.truncf %17 : vector<64x128xf32> to vector<64x128xbf16>
    %cst_16 = arith.constant dense<0.000000e+00> : vector<32x128xf32>
    %20 = tpu.matmul %18, %19, %cst_16 {dimension_numbers = #tpu.dot_dimension_numbers<[1], [0], [0], [1], [0, 0, 1, 1], [], []>} : vector<32x64xbf16>, vector<64x128xbf16>, vector<32x128xf32> -> vector<32x128xf32>
    %c0_17 = arith.constant 0 : index
    %c0_18 = arith.constant 0 : index
    %21 = vector.load %arg9[%c0_17, %c0_18] : memref<32x1xf32, #tpu.memory_space<vmem>>, vector<32x1xf32>
    %22 = vector.broadcast %21 : vector<32x1xf32> to vector<32x128xf32>
    %23 = arith.addf %20, %22 : vector<32x128xf32>
    %cst_19 = arith.constant 0.000000e+00 : f32
    %24 = vector.broadcast %cst_19 : f32 to vector<32x128xf32>
    %25 = arith.maximumf %23, %24 : vector<32x128xf32>
    %26 = arith.truncf %25 : vector<32x128xf32> to vector<32x128xbf16>
    %27 = tpu.concatenate %26, %1 in 0 : vector<32x128xbf16>, vector<32x128xbf16> -> vector<64x128xbf16>
    %c0_20 = arith.constant 0 : index
    %c0_21 = arith.constant 0 : index
    %c0_22 = arith.constant 0 : index
    %28 = vector.load %arg4[%c0_20, %c0_21, %c0_22] : memref<1x1x64xbf16, #tpu.memory_space<vmem>>, vector<1x1x64xbf16>
    %29 = vector.shape_cast %28 : vector<1x1x64xbf16> to vector<1x64xbf16>
    %cst_23 = arith.constant dense<0.000000e+00> : vector<1x128xf32>
    %30 = tpu.matmul %29, %27, %cst_23 {dimension_numbers = #tpu.dot_dimension_numbers<[1], [0], [0], [1], [0, 0, 1, 1], [], []>} : vector<1x64xbf16>, vector<64x128xbf16>, vector<1x128xf32> -> vector<1x128xf32>
    %31 = vector.shape_cast %30 : vector<1x128xf32> to vector<1x1x128xf32>
    %c0_24 = arith.constant 0 : index
    %c0_25 = arith.constant 0 : index
    %c0_26 = arith.constant 0 : index
    %32 = vector.load %arg10[%c0_24, %c0_25, %c0_26] : memref<1x1x128xf32, #tpu.memory_space<vmem>>, vector<1x1x128xf32>
    tpu.vector_store %arg10[%c0_24, %c0_25, %c0_26], %31 {strides = array<i32>} : memref<1x1x128xf32, #tpu.memory_space<vmem>>, vector<1x1x128xf32>,
    return
  }
  func.func @transform_0(%arg0: i32, %arg1: i32) -> (i32, i32, i32) {
    %c0_i32 = arith.constant 0 : i32
    %c0_i32_0 = arith.constant 0 : i32
    return %arg0, %c0_i32, %arg1 : i32, i32, i32
  }
  func.func @transform_1(%arg0: i32, %arg1: i32) -> (i32, i32, i32) {
    %c0_i32 = arith.constant 0 : i32
    %c0_i32_0 = arith.constant 0 : i32
    %c0_i32_1 = arith.constant 0 : i32
    return %arg0, %c0_i32, %c0_i32_0 : i32, i32, i32
  }
  func.func @transform_2(%arg0: i32, %arg1: i32) -> (i32, i32, i32) {
    %c0_i32 = arith.constant 0 : i32
    %c0_i32_0 = arith.constant 0 : i32
    %c0_i32_1 = arith.constant 0 : i32
    return %arg0, %c0_i32, %c0_i32_0 : i32, i32, i32
  }
  func.func @transform_3(%arg0: i32, %arg1: i32) -> (i32, i32) {
    %c0_i32 = arith.constant 0 : i32
    %c0_i32_0 = arith.constant 0 : i32
    %c0_i32_1 = arith.constant 0 : i32
    return %c0_i32, %c0_i32_0 : i32, i32
  }
  func.func @transform_4(%arg0: i32, %arg1: i32) -> (i32, i32) {
    %c0_i32 = arith.constant 0 : i32
    %c0_i32_0 = arith.constant 0 : i32
    %c0_i32_1 = arith.constant 0 : i32
    return %c0_i32, %c0_i32_0 : i32, i32
  }
  func.func @transform_5(%arg0: i32, %arg1: i32) -> (i32, i32) {
    %c0_i32 = arith.constant 0 : i32
    %c0_i32_0 = arith.constant 0 : i32
    %c0_i32_1 = arith.constant 0 : i32
    return %c0_i32, %c0_i32_0 : i32, i32
  }
  func.func @transform_6(%arg0: i32, %arg1: i32) -> (i32, i32) {
    %c0_i32 = arith.constant 0 : i32
    %c0_i32_0 = arith.constant 0 : i32
    %c0_i32_1 = arith.constant 0 : i32
    return %c0_i32, %c0_i32_0 : i32, i32
  }
  func.func @transform_7(%arg0: i32, %arg1: i32) -> (i32, i32) {
    %c0_i32 = arith.constant 0 : i32
    %c0_i32_0 = arith.constant 0 : i32
    %c0_i32_1 = arith.constant 0 : i32
    return %c0_i32, %c0_i32_0 : i32, i32
  }
  func.func @transform_8(%arg0: i32, %arg1: i32) -> (i32, i32, i32) {
    %c0_i32 = arith.constant 0 : i32
    %c0_i32_0 = arith.constant 0 : i32
    return %arg0, %c0_i32, %arg1 : i32, i32, i32
  }
}

</mosaic_0001>

<bundles_post_ra>
// kernel: tpu_custom_call.1
= control target key start
LH: loop header
LB: loop body
LE: loop exit
PB: predicated region body
PF: predicated region fallthrough
CT: control target
= control target key end

     0   :  { %13 = vsyncpa [#allocation3], 0  ;;  %s1671_s0 = inlined_call_operand.vmem [shape: bf16[2,32,128], index: 0, kind: input, shape index: {}]   ;;  %s1672_s1 = inlined_call_operand.vmem [shape: f32[2,128,1], index: 1, kind: input, shape index: {}]   ;;  %s1673_s2 = inlined_call_operand.vmem [shape: bf16[2,1,64], index: 2, kind: input, shape index: {}]   ;;  %s1674_s3 = inlined_call_operand.vmem [shape: bf16[128,32], index: 3, kind: input, shape index: {}]   ;;  %s1675_s4 = inlined_call_operand.vmem [shape: bf16[64,128], index: 4, kind: input, shape index: {}]   ;;  %s1676_s5 = inlined_call_operand.vmem [shape: f32[64,1], index: 5, kind: input, shape index: {}]   ;;  %s1677_s6 = inlined_call_operand.vmem [shape: bf16[32,64], index: 6, kind: input, shape index: {}]   ;;  %s1678_s7 = inlined_call_operand.vmem [shape: f32[32,1], index: 7, kind: input, shape index: {}]   ;;  %s1679_s8 = inlined_call_operand.hbm [shape: f32[2,1,128], index: 8, kind: output, shape index: {}]  }
   0x1   :  { %15 = vsyncpa [#allocation3 + $0x1], 0  ;;  %s1431_s27 = smov 0   ;;  %s1433_s28 = smov 0  }
   0x2   :  { %s1435_s29 = smov 0   ;;  %s1437_s30 = smov 0  }
   0x3   :  { %s1439_s9 = smov 0   ;;  %s1441_s10 = smov 0  }
   0x4 LB: > { %s1084_s11 = sadd.s32 4294967295, %s1380_s10   ;;  %s1085_s12 = sadd.s32 4294967294, %s1380_s10   ;;  %s1380_s10 = sphi %s1441_s10, %s21_s10   ;;  %s1376_s9 = sphi %s1439_s9, %s1686_s9   ;;  %s1372_s30 = sphi %s1437_s30, %s1685_s30   ;;  %s1368_s29 = sphi %s1435_s29, %s1684_s29   ;;  %s1364_s28 = sphi %s1433_s28, %s1683_s28   ;;  %s1360_s27 = sphi %s1431_s27, %s1682_s27  }
   0x5   : > { %s33_s13 = sadd.s32 1, %s1376_s9  ;;  %s227_s14 = sadd.s32 1, %s1368_s29 }
   0x6   : > { %p35_p0 = scmp.ge.s32.totalorder %s33_s13, 2  ;;  %p237_p1 = scmp.ne.s32.totalorder %s1368_s29, %s1364_s28 }
   0x7   : > { %p238_p2 = scmp.eq.s32.totalorder %s1084_s11, 1  ;;  %p243_p3 = scmp.ne.s32.totalorder %s1364_s28, %s1360_s27 }
   0x8   : > { %s1688_s13 = smov (%p35_p0, %s33_s13), 0  ;;  %p244_p5 = scmp.eq.s32.totalorder %s1085_s12, 1 }
   0x9   : > { %p1471_p4 = por %p238_p2, %p237_p1  ;;  %s222_s16 = ssub.s32 %s1376_s9, %s1688_s13 }
   0xa   : > { %p1088_p6 = scmp.ge.s32.totalorder %s1380_s10, 1  ;;  %p225_p7 = scmp.eq.s32.totalorder %s222_s16, 0 }
   0xb   : > { %p1478_p8 = por %p244_p5, %p243_p3  ;;  %p302_p9 = scmp.lt.s32.totalorder %s1380_s10, 3 }
   0xc   : > { %s1484_s18 = scalar_select %p225_p7, %s1368_s29, %s227_s14  }
   0xd   : > { %p303_p10 = pnand %p1088_p6, %p302_p9 }
   0xe   : > { %p346_p11 = scmp.lt.s32.totalorder (!%p303_p10), %s1372_s30, 1  ;;  %v1288_v0 = vld [vmem:[%s1674_s3] sm:$0xff] (!%p303_p10)   ;;  %vm531_vm0 = vcmask (!%p303_p10), 261120   ;;  %v1382_v1 = vmov (!%p303_p10), 0   ;;  %v1289_v6 = vld [vmem:[%s1674_s3 + $0x8] sm:$0xff] (!%p303_p10)   ;;  %v1290_v9 = vld [vmem:[%s1674_s3 + $0x10] sm:$0xff] (!%p303_p10)  }
   0xf   : > { %306 = sbr.rel (%p303_p10) target bundleno = 988 (0x3dc), region = 52  ;;  %1162 = vmatprep.mubr.msk.bf16.mxu0 (!%p303_p10), %vm531_vm0, %v1288_v0  ;;  %1284 = vset.pattern.permute.xlu0 (!%p303_p10), %v1382_v1  ;;  %v1291_v12 = vld [vmem:[%s1674_s3 + $0x18] sm:$0xff] (!%p303_p10)   ;;  %v1292_v13 = vld [vmem:[%s1674_s3 + $0x20] sm:$0xff] (!%p303_p10)   ;;  %v1293_v18 = vld [vmem:[%s1674_s3 + $0x28] sm:$0xff] (!%p303_p10)   ;;  %vm872_vm1 = vcmask (!%p303_p10), 523264   ;;  %vm1384_vm2 = vmmov (!%p303_p10), 0  }
  0x10   : > { %1285 = vset.pattern.permute.xlu1 (!%p303_p10), %v1382_v1  ;;  %v1294_v21 = vld [vmem:[%s1674_s3 + $0x30] sm:$0xff] (!%p303_p10)   ;;  %v1295_v24 = vld [vmem:[%s1674_s3 + $0x38] sm:$0xff] (!%p303_p10)   ;;  %v685_v27 = vld [vmem:[%s1676_s5] sm:$0xff] (!%p303_p10)  ;;  %s344_s16 = sand.u32 (!%p303_p10), 1, %s1364_s28   ;;  %s1120_s20 = sshll.u32 (!%p303_p10), %s1372_s30, 4 }
  0x11   : > { %v686_v28 = vld [vmem:[%s1676_s5 + $0x8] sm:$0xff] (!%p303_p10)  ;;  %v687_v29 = vld [vmem:[%s1676_s5 + $0x10] sm:$0xff] (!%p303_p10)  ;;  %v688_v30 = vld [vmem:[%s1676_s5 + $0x18] sm:$0xff] (!%p303_p10)  ;;  %s1626_s24 = scalar_lea.hbm (!%p303_p10), %s1679_s8, %s1120_s20 }
  0x12   : > { %v689_v31 = vld [vmem:[%s1676_s5 + $0x20] sm:$0xff] (!%p303_p10)  ;;  %v690_v32 = vld [vmem:[%s1676_s5 + $0x28] sm:$0xff] (!%p303_p10)  ;;  %v691_v33 = vld [vmem:[%s1676_s5 + $0x30] sm:$0xff] (!%p303_p10) }
  0x13   : > { %v692_v34 = vld [vmem:[%s1676_s5 + $0x38] sm:$0xff] (!%p303_p10)  ;;  %v838_v35 = vld [vmem:[%s1678_s7] sm:$0xff] (!%p303_p10)  ;;  %v839_v36 = vld [vmem:[%s1678_s7 + $0x8] sm:$0xff] (!%p303_p10) }
  0x14   : > { %v840_v37 = vld [vmem:[%s1678_s7 + $0x10] sm:$0xff] (!%p303_p10)  ;;  %v841_v38 = vld [vmem:[%s1678_s7 + $0x18] sm:$0xff] (!%p303_p10)  ;;  %v1296_v39 = vld [vmem:[%s1675_s4] sm:$0xff] (!%p303_p10)  }
  0x15   : > { %1194 = vmatprep.mubr.bf16.mxu1 (!%p303_p10), %v1296_v39 }
  0x16   : > { %s1491_s21 = scalar_select %p346_p11, %s1372_s30, 1 }
  0x17   : > { %s1385_s30 = smov [#allocation2]  }
  0x18   : > { %s1123_s22 = sshll.u32 %s1491_s21, 4  ;;  %s1124_s23 = sshll.u32 %s1491_s21, 7 }
  0x19   : > { %s353_s26 = scalar_lea.vmem %s1671_s0, %s1123_s22  ;;  %s1504_s14 = scalar_lea.vmem %s1672_s1, %s1124_s23 }
  0x1a   : > { %v1499_v2 = vld [vmem:[%s353_s26] sm:$0xff]   ;;  %v1506_v3 = vld [vmem:[%s353_s26 + $0x8] sm:$0xff]   ;;  %v385_v5 = vld [vmem:[%s1504_s14 + $0x10] sm:$0xff]  ;;  %s361_s12 = scalar_lea.vmem %s1673_s2, %s1491_s21  ;;  %s980_s21 = scalar_lea.sflag [#allocation3], %s344_s16 }
  0x1b   : > { %1158 = vmatprep.subr.bf16.mxu0 %v1499_v2  ;;  %v383_v4 = vld [vmem:[%s1504_s14] sm:$0xff]  ;;  %411 = vperm.xlu1 %1285, %v385_v5   ;;  %v384_v7 = vld [vmem:[%s1504_s14 + $0x8] sm:$0xff]  ;;  %v386_v8 = vld [vmem:[%s1504_s14 + $0x18] sm:$0xff]  ;;  %s1306_s26 = sshll.u32 %s1385_s30, 4  ;;  %s1307_s26 = int_to_ptr.vmem [resolvable:$false] %s1306_s26 }
  0x1c   : > { %1159 = vmatpush3.bf16.msra.mxu0 %v1499_v2  ;;  %401 = vperm.xlu0 %1284, %v383_v4   ;;  %v387_v10 = vld [vmem:[%s1504_s14 + $0x20] sm:$0xff]  ;;  %v388_v11 = vld [vmem:[%s1504_s14 + $0x28] sm:$0xff]  ;;  %v389_v14 = vld [vmem:[%s1504_s14 + $0x30] sm:$0xff]  ;;  %s1308_s11 = scalar_lea.vmem %s1307_s26, 32 }
  0x1d   : > { %1160 = vmatprep.subr.bf16.mxu0 %v1506_v3  ;;  %v390_v15 = vld [vmem:[%s1504_s14 + $0x38] sm:$0xff]  ;;  %v391_v16 = vld [vmem:[%s1504_s14 + $0x40] sm:$0xff]  ;;  %v392_v17 = vld [vmem:[%s1504_s14 + $0x48] sm:$0xff] }
  0x1e   : > { %v393_v19 = vld [vmem:[%s1504_s14 + $0x50] sm:$0xff]  ;;  %v394_v20 = vld [vmem:[%s1504_s14 + $0x58] sm:$0xff]  ;;  %v395_v22 = vld [vmem:[%s1504_s14 + $0x60] sm:$0xff] }
  0x1f   : > { %416 = vperm.xlu1 %1285, %v386_v8   ;;  %v396_v23 = vld [vmem:[%s1504_s14 + $0x68] sm:$0xff]  ;;  %v397_v25 = vld [vmem:[%s1504_s14 + $0x70] sm:$0xff]  ;;  %v398_v26 = vld [vmem:[%s1504_s14 + $0x78] sm:$0xff]  ;;  %s345_s14 = scalar_lea.vmem [#allocation2], %s344_s16 }
  0x20   : > { %1161 = vmatpush3.bf16.msra.mxu0 %v1506_v3  ;;  %406 = vperm.xlu0 %1284, %v384_v7   ;;  %s993_s19 = sshll.u32 %s345_s14, 4  ;;  %s1621_s19 = int_to_ptr.vmem [resolvable:$true] %s993_s19 }
  0x21   : > { %s1302_s25 = scalar_lea.vmem %s1621_s19, 16  ;;  %p1309_p1 = scmp.lt.s32.totalorder %s1621_s19, %s1307_s26 }
  0x22   : > { %p1303_p12 = scmp.ne.s32.totalorder %s1621_s19, %s1302_s25  ;;  %p1310_p2 = scmp.lt.s32.totalorder %s1308_s11, %s1302_s25 }
  0x23   : > { %1163 = vmatmul.mubr.msk.bf16.vlgmr.msra.gmra.mrb[0].mxu0 %vm531_vm0, %v1289_v6  ;;  %426 = vperm.xlu1 %1285, %v388_v11  }
  0x24   : > { %1166 = vmatprep.mubr.msk.bf16.mxu0 %vm531_vm0, %v1290_v9  ;;  %421 = vperm.xlu0 %1284, %v387_v10   ;;  %p1304_p13 = pnand %p1303_p12, %p1471_p4  ;;  %p1311_p3 = por %p1310_p2, %p1309_p1 }
  0x26   : > { %p1305_p0 = pneg %p1304_p13 }
  0x27   : > { %436 = vperm.xlu1 %1285, %v390_v15  }
  0x28   : > { %431 = vperm.xlu0 %1284, %v389_v14   ;;  %p1312_p5 = pnand %p1311_p3, %p1305_p0 }
  0x2b   : > { %1167 = vmatmul.mubr.msk.bf16.gmra.mrb[4].mxu0 %vm531_vm0, %v1291_v12  ;;  %446 = vperm.xlu1 %1285, %v392_v17  }
  0x2c   : > { %1170 = vmatprep.mubr.msk.bf16.mxu0 %vm531_vm0, %v1292_v13  ;;  %441 = vperm.xlu0 %1284, %v391_v16  }
  0x2f   : > { %456 = vperm.xlu1 %1285, %v394_v20  }
  0x30   : > { %451 = vperm.xlu0 %1284, %v393_v19  }
  0x33   : > { %1171 = vmatmul.mubr.msk.bf16.gmra.mrb[8].mxu0 %vm531_vm0, %v1293_v18  ;;  %466 = vperm.xlu1 %1285, %v396_v23  }
  0x34   : > { %1174 = vmatprep.mubr.msk.bf16.mxu0 %vm531_vm0, %v1294_v21  ;;  %461 = vperm.xlu0 %1284, %v395_v22  }
  0x37   : > { %476 = vperm.xlu1 %1285, %v398_v26  }
  0x38   : > { %471 = vperm.xlu0 %1284, %v397_v25  }
  0x3b   : > { %1175 = vmatmul.mubr.msk.bf16.gmra.mrb[12].mxu0 %vm531_vm0, %v1295_v24  ;;  %700 = vperm.xlu1 %1285, %v686_v28  }
  0x3c   : > { %695 = vperm.xlu0 %1284, %v685_v27  }
  0x3f   : > { %710 = vperm.xlu1 %1285, %v688_v30  }
  0x40   : > { %705 = vperm.xlu0 %1284, %v687_v29  }
  0x43   : > { %720 = vperm.xlu1 %1285, %v690_v32  }
  0x44   : > { %715 = vperm.xlu0 %1284, %v689_v31  }
  0x47   : > { %730 = vperm.xlu1 %1285, %v692_v34  }
  0x48   : > { %725 = vperm.xlu0 %1284, %v691_v33  }
  0x4b   : > { %849 = vperm.xlu1 %1285, %v839_v36  }
  0x4c   : > { %844 = vperm.xlu0 %1284, %v838_v35  }
  0x4f   : > { %859 = vperm.xlu1 %1285, %v841_v38  }
  0x50   : > { %854 = vperm.xlu0 %1284, %v840_v37  }
  0x9a   : > { %v412_v41 = vpop.permute.xlu1 %411 }
  0x9b   : > { %v402_v40 = vpop.permute.xlu0 %401 }
  0x9e   : > { %v417_v43 = vpop.permute.xlu1 %416 }
  0x9f   : > { %v407_v42 = vpop.permute.xlu0 %406 }
  0xa2   : > { %v427_v45 = vpop.permute.xlu1 %426 }
  0xa3   : > { %v422_v44 = vpop.permute.xlu0 %421 }
  0xa6   : > { %v437_v50 = vpop.permute.xlu1 %436 }
  0xa7   : > { %v432_v46 = vpop.permute.xlu0 %431 }
  0xaa   : > { %v447_v62 = vpop.permute.xlu1 %446 }
  0xab   : > { %v442_v58 = vpop.permute.xlu0 %441 }
  0xae   : > { %v457_v13 = vpop.permute.xlu1 %456 }
  0xaf   : > { %v452_v9 = vpop.permute.xlu0 %451 }
  0xb2   : > { %v467_v26 = vpop.permute.xlu1 %466 }
  0xb3   : > { %v462_v21 = vpop.permute.xlu0 %461 }
  0xb6   : > { %v477_v38 = vpop.permute.xlu1 %476 }
  0xb7   : > { %v472_v33 = vpop.permute.xlu0 %471 }
  0xf6   : > { %v1164_v47 = vpop.f32.mrb[0].mxu0 }
  0xf7   : > { %v599_v48 = vadd.f32 %v1164_v47, %v412_v41  ;;  %v590_v49 = vpop.f32.mrb[1].mxu0 }
  0xf8   : > { %v591_v51 = vadd.f32 %v590_v49, %v402_v40  ;;  %v1165_v52 = vpop.f32.mrb[2].mxu0 }
  0xf9   : > { %v602_v53 = vadd.f32 %v1165_v52, %v417_v43  ;;  %v593_v54 = vpop.f32.mrb[3].mxu0  ;;  %v655_v56 = vmax.f32 %v599_v48, 0.0  ;;  %v1299_v52 = vld [vmem:[%s1675_s4 + $0x18] sm:$0xff]  }
  0xfa   : > { %v594_v55 = vadd.f32 %v593_v54, %v407_v42  ;;  %v653_v59 = vmax.f32 %v591_v51, 0.0  ;;  %v1298_v51 = vld [vmem:[%s1675_s4 + $0x10] sm:$0xff]   ;;  %v696_v54 = vpop.permute.xlu0 %695 }
  0xfb   : > { %v656_v57 = vmax.f32 %v602_v53, 0.0  ;;  %v1300_v53 = vld [vmem:[%s1677_s6] sm:$0xff]  }
  0xfc   : > { %v654_v60 = vmax.f32 %v594_v55, 0.0  ;;  %1210 = vmatprep.mubr.msk.bf16.mxu0 %vm872_vm1, %v1300_v53  ;;  %v701_v55 = vpop.permute.xlu1 %700 }
  0xfd   : > { %v678_v61 = vpack.c.bf16 %v656_v57, %v655_v56 }
  0xfe   : > { %v1168_v63 = vpop.f32.mrb[4].mxu0  ;;  %v677_v0 = vpack.c.bf16 %v654_v60, %v653_v59  ;;  %v706_v56 = vpop.permute.xlu0 %705 }
  0xff   : > { %v615_v1 = vadd.f32 %v1168_v63, %v432_v46  ;;  %v606_v4 = vpop.f32.mrb[5].mxu0 }
 0x100   : > { %v607_v5 = vadd.f32 %v606_v4, %v422_v44  ;;  %v1169_v6 = vpop.f32.mrb[6].mxu0  ;;  %1178 = vmatprep.subr.bf16.mxu1 %v677_v0  ;;  %v711_v57 = vpop.permute.xlu1 %710 }
 0x101   : > { %v618_v7 = vadd.f32 %v1169_v6, %v437_v50  ;;  %v609_v8 = vpop.f32.mrb[7].mxu0  ;;  %1179 = vmatpush3.bf16.msra.mxu1 %v677_v0  ;;  %v659_v11 = vmax.f32 %v615_v1, 0.0  ;;  %v1297_v50 = vld [vmem:[%s1675_s4 + $0x8] sm:$0xff]  }
 0x102   : > { %v610_v10 = vadd.f32 %v609_v8, %v427_v45  ;;  %1180 = vmatprep.subr.bf16.mxu1 %v678_v61  ;;  %v657_v14 = vmax.f32 %v607_v5, 0.0 }
 0x103   : > { %v660_v12 = vmax.f32 %v618_v7, 0.0 }
 0x104   : > { %v658_v15 = vmax.f32 %v610_v10, 0.0  ;;  %v721_v4 = vpop.permute.xlu1 %720 }
 0x105   : > { %v680_v16 = vpack.c.bf16 %v660_v12, %v659_v11  ;;  %1181 = vmatpush3.bf16.msra.mxu1 %v678_v61  ;;  %v716_v61 = vpop.permute.xlu0 %715 }
 0x106   : > { %v679_v17 = vpack.c.bf16 %v658_v15, %v657_v14  ;;  %v1172_v18 = vpop.f32.mrb[8].mxu0 }
 0x107   : > { %v631_v19 = vadd.f32 %v1172_v18, %v452_v9  ;;  %v622_v20 = vpop.f32.mrb[9].mxu0 }
 0x108   : > { %v623_v22 = vadd.f32 %v622_v20, %v442_v58  ;;  %v1173_v23 = vpop.f32.mrb[10].mxu0  ;;  %1182 = vmatprep.subr.bf16.mxu1 %v679_v17 }
 0x109   : > { %v634_v24 = vadd.f32 %v1173_v23, %v457_v13  ;;  %v625_v25 = vpop.f32.mrb[11].mxu0  ;;  %1183 = vmatpush3.bf16.msra.mxu1 %v679_v17  ;;  %v663_v28 = vmax.f32 %v631_v19, 0.0  ;;  %v726_v11 = vpop.permute.xlu0 %725 }
 0x10a   : > { %v626_v27 = vadd.f32 %v625_v25, %v447_v62  ;;  %1184 = vmatprep.subr.bf16.mxu1 %v680_v16  ;;  %v661_v30 = vmax.f32 %v623_v22, 0.0 }
 0x10b   : > { %v664_v29 = vmax.f32 %v634_v24, 0.0 }
 0x10c   : > { %v662_v31 = vmax.f32 %v626_v27, 0.0 }
 0x10d   : > { %v682_v32 = vpack.c.bf16 %v664_v29, %v663_v28  ;;  %1185 = vmatpush3.bf16.msra.mxu1 %v680_v16  ;;  %v731_v16 = vpop.permute.xlu1 %730  ;;  %v1301_v28 = vld [vmem:[%s1677_s6 + $0x8] sm:$0xff]   ;;  %v1383_v29 = vmov 0.0  }
 0x10e   : > { %v681_v34 = vpack.c.bf16 %v662_v31, %v661_v30  ;;  %v1176_v35 = vpop.f32.mrb[12].mxu0  ;;  %v845_v30 = vpop.permute.xlu0 %844 }
 0x10f   : > { %v647_v36 = vadd.f32 %v1176_v35, %v472_v33  ;;  %v638_v37 = vpop.f32.mrb[13].mxu0 }
 0x110   : > { %v639_v39 = vadd.f32 %v638_v37, %v462_v21  ;;  %v1177_v40 = vpop.f32.mrb[14].mxu0  ;;  %1186 = vmatprep.subr.bf16.mxu1 %v681_v34 }
 0x111   : > { %v650_v41 = vadd.f32 %v1177_v40, %v477_v38  ;;  %v641_v42 = vpop.f32.mrb[15].mxu0  ;;  %1187 = vmatpush3.bf16.msra.mxu1 %v681_v34  ;;  %v667_v44 = vmax.f32 %v647_v36, 0.0  ;;  %v850_v31 = vpop.permute.xlu1 %849 }
 0x112   : > { %v642_v43 = vadd.f32 %v641_v42, %v467_v26  ;;  %1188 = vmatprep.subr.bf16.mxu1 %v682_v32  ;;  %v665_v46 = vmax.f32 %v639_v39, 0.0 }
 0x113   : > { %v668_v45 = vmax.f32 %v650_v41, 0.0 }
 0x114   : > { %v666_v47 = vmax.f32 %v642_v43, 0.0 }
 0x115   : > { %v684_v48 = vpack.c.bf16 %v668_v45, %v667_v44  ;;  %1189 = vmatpush3.bf16.msra.mxu1 %v682_v32  ;;  %v855_v32 = vpop.permute.xlu0 %854  ;;  %v860_v36 = vpop.permute.xlu1 %859 }
 0x116   : > { %v683_v49 = vpack.c.bf16 %v666_v47, %v665_v46 }
 0x118   : > { %1190 = vmatprep.subr.bf16.mxu1 %v683_v49 }
 0x119   : > { %1191 = vmatpush3.bf16.msra.mxu1 %v683_v49 }
 0x11a   : > { %1192 = vmatprep.subr.bf16.mxu1 %v684_v48 }
 0x11d   : > { %1193 = vmatpush3.bf16.msra.mxu1 %v684_v48  ;;  %v934_v48 = vld [vmem:[%s361_s12] sm:$0x1] }
 0x11e   : > { %1214 = vmatprep.subr.bf16.mxu1 %v1383_v29 }
 0x120   : > { %1195 = vmatmul.mubr.bf16.vlgmr.msra.gmra.mrb[0].mxu1 %v1297_v50 }
 0x121   : > { %1198 = vmatprep.mubr.bf16.mxu1 %v1298_v51 }
 0x128   : > { %1199 = vmatmul.mubr.bf16.gmra.mrb[4].mxu1 %v1299_v52 }
 0x129   : > { %1222 = vmatprep.mubr.msk.bf16.mxu1 %vm1384_vm2, %v1383_v29 }
 0x1f3   : > { %v1196_v58 = vpop.f32.mrb[0].mxu1 }
 0x1f4   : > { %v800_v59 = vadd.f32 %v1196_v58, %v706_v56  ;;  %v791_v60 = vpop.f32.mrb[1].mxu1 }
 0x1f5   : > { %v792_v62 = vadd.f32 %v791_v60, %v696_v54  ;;  %v1197_v63 = vpop.f32.mrb[2].mxu1 }
 0x1f6   : > { %v803_v0 = vadd.f32 %v1197_v63, %v711_v57  ;;  %v794_v1 = vpop.f32.mrb[3].mxu1  ;;  %v824_v6 = vmax.f32 %v800_v59, 0.0 }
 0x1f7   : > { %v795_v5 = vadd.f32 %v794_v1, %v701_v55  ;;  %v822_v8 = vmax.f32 %v792_v62, 0.0 }
 0x1f8   : > { %v825_v7 = vmax.f32 %v803_v0, 0.0 }
 0x1f9   : > { %v823_v9 = vmax.f32 %v795_v5, 0.0 }
 0x1fa   : > { %v835_v10 = vpack.c.bf16 %v825_v7, %v824_v6 }
 0x1fb   : > { %v834_v12 = vpack.c.bf16 %v823_v9, %v822_v8  ;;  %v1200_v13 = vpop.f32.mrb[4].mxu1 }
 0x1fc   : > { %v816_v14 = vadd.f32 %v1200_v13, %v726_v11  ;;  %v807_v15 = vpop.f32.mrb[5].mxu1 }
 0x1fd   : > { %v808_v17 = vadd.f32 %v807_v15, %v716_v61  ;;  %v1201_v18 = vpop.f32.mrb[6].mxu1  ;;  %1202 = vmatprep.subr.bf16.mxu0 %v834_v12 }
 0x1fe   : > { %v819_v19 = vadd.f32 %v1201_v18, %v731_v16  ;;  %v810_v20 = vpop.f32.mrb[7].mxu1  ;;  %1203 = vmatpush3.bf16.msra.mxu0 %v834_v12  ;;  %v828_v22 = vmax.f32 %v816_v14, 0.0 }
 0x1ff   : > { %v811_v21 = vadd.f32 %v810_v20, %v721_v4  ;;  %1204 = vmatprep.subr.bf16.mxu0 %v835_v10  ;;  %v826_v24 = vmax.f32 %v808_v17, 0.0 }
 0x200   : > { %v829_v23 = vmax.f32 %v819_v19, 0.0 }
 0x201   : > { %v827_v25 = vmax.f32 %v811_v21, 0.0 }
 0x202   : > { %v837_v26 = vpack.c.bf16 %v829_v23, %v828_v22  ;;  %1205 = vmatpush3.bf16.msra.mxu0 %v835_v10 }
 0x203   : > { %v836_v27 = vpack.c.bf16 %v827_v25, %v826_v24 }
 0x205   : > { %1206 = vmatprep.subr.bf16.mxu0 %v836_v27 }
 0x206   : > { %1207 = vmatpush3.bf16.msra.mxu0 %v836_v27 }
 0x207   : > { %1208 = vmatprep.subr.bf16.mxu0 %v837_v26 }
 0x20a   : > { %1209 = vmatpush3.bf16.msra.mxu0 %v837_v26 }
 0x20d   : > { %1211 = vmatmul.mubr.msk.bf16.vlgmr.msra.gmra.mrb[16].mxu0 %vm872_vm1, %v1301_v28 }
 0x2e0   : > { %v1212_v33 = vpop.f32.mrb[16].mxu0 }
 0x2e1   : > { %v922_v34 = vadd.f32 %v1212_v33, %v855_v32  ;;  %v913_v35 = vpop.f32.mrb[17].mxu0 }
 0x2e2   : > { %v914_v37 = vadd.f32 %v913_v35, %v845_v30  ;;  %v1213_v38 = vpop.f32.mrb[18].mxu0 }
 0x2e3   : > { %v925_v39 = vadd.f32 %v1213_v38, %v860_v36  ;;  %v916_v40 = vpop.f32.mrb[19].mxu0  ;;  %v930_v42 = vmax.f32 %v922_v34, 0.0 }
 0x2e4   : > { %v917_v41 = vadd.f32 %v916_v40, %v850_v31  ;;  %v928_v44 = vmax.f32 %v914_v37, 0.0 }
 0x2e5   : > { %v931_v43 = vmax.f32 %v925_v39, 0.0 }
 0x2e6   : > { %v929_v45 = vmax.f32 %v917_v41, 0.0 }
 0x2e7   : > { %v933_v46 = vpack.c.bf16 %v931_v43, %v930_v42 }
 0x2e8   : > { %v932_v47 = vpack.c.bf16 %v929_v45, %v928_v44 }
 0x2ea   : > { %1215 = vmatpush3.bf16.msra.mxu1 %v932_v47 }
 0x2eb   : > { %1216 = vmatprep.subr.bf16.mxu1 %v1383_v29 }
 0x2ee   : > { %1217 = vmatpush3.bf16.msra.mxu1 %v933_v46 }
 0x2ef   : > { %1218 = vmatprep.subr.bf16.mxu1 %v1383_v29 }
 0x2f2   : > { %1219 = vmatpush3.bf16.msra.mxu1 %v1499_v2 }
 0x2f3   : > { %1220 = vmatprep.subr.bf16.mxu1 %v1383_v29 }
 0x2f6   : > { %1221 = vmatpush3.bf16.msra.mxu1 %v1506_v3 }
 0x2f9   : > { %1223 = vmatmul.mubr.msk.bf16.vlgmr.msra.gmra.mrb[8].mxu1 %vm872_vm1, %v934_v48 }
 0x3cc   : > { %v972_v2 = vpop.f32.mrb[8].mxu1 }
 0x3cd   : > { %978 = vst [vmem:[%s345_s14] sm:$0x1] %v972_v2  ;;  %v1224_v3 = vpop.f32.mrb[9].mxu1 }
 0x3ce   : > { %v975_v49 = vpop.f32.mrb[10].mxu1 }
 0x3cf   : > { %1315 = shalt.err (!%p1312_p5)
}
 0x3d0   : > { %s1316_s12 = scalar_lea.hbm %s1626_s24, 16  ;;  %s1320_s20 = scalar_lea.hbm %s1679_s8, 32 }
 0x3d1   : > { %p1317_p6 = scmp.ne.s32.totalorder %s1626_s24, %s1316_s12  ;;  %p1321_p10 = scmp.lt.u32.totalorder %s1626_s24, %s1679_s8 }
 0x3d2   : > { %p1322_p11 = scmp.lt.u32.totalorder %s1320_s20, %s1316_s12  ;;  %p1324_p13 = scmp.lt.u32.totalorder %s1316_s12, %s1626_s24 }
 0x3d3   : > { %p1318_p7 = pnand %p1317_p6, %p1471_p4 }
 0x3d4   : > { %p1323_p12 = por %p1322_p11, %p1321_p10 }
 0x3d5   : > { %p1319_p9 = pneg %p1318_p7 }
 0x3d6   : > { %p1325_p0 = por %p1324_p13, %p1323_p12 }
 0x3d8   : > { %p1326_p1 = pnand %p1325_p0, %p1319_p9 }
 0x3da   : > { %1329 = shalt.err (!%p1326_p1)
}
 0x3db   : > { %1226 = dma.vmem_to_hbm [thread:$0]  (%p1471_p4), %s1621_s19, 16, %s1626_s24, %s980_s21   ;;  %v1225_v50 = vpop.f32.mrb[11].mxu1 }
 0x3dc PF: > { %p1232_p2 = scmp.ge.s32.totalorder %s1380_s10, 2  ;;  %s1005_s25 = sand.u32 1, %s1360_s27  }
 0x3dd   : > { %s1006_s30 = scalar_lea.sflag [#allocation3], %s1005_s25 }
 0x3de   : > { %p1229_p3 = pnand %p1232_p2, %p1478_p8 }
 0x3e0   : > { %1355 = dma.done.wait (!%p1229_p3), %s1006_s30, 16  }
 0x3e1   : > { %1357 = vsyncadd (!%p1229_p3), %s1006_s30, 4294967280  ;;  %s21_s10 = sadd.s32 1, %s1380_s10   ;;  %s1682_s27 = smov %s1364_s28 }
 0x3e2   : > { %p18_p5 = scmp.ge.s32.totalorder %s21_s10, 4   ;;  %s1683_s28 = smov %s1368_s29 }
 0x3e3   : > { %s1684_s29 = smov %s1484_s18  ;;  %s1685_s30 = smov %s1376_s9 }
 0x3e4   : > { %s1686_s9 = smov %s1688_s13  ;;  %20 = sbr.rel (!%p18_p5) target bundleno = 4 (0x4), region = 93 }
 0x3eb   :  { %1010 = vsyncpa [#allocation3], 1 }
 0x3ec   :  { %1012 = vsyncpa [#allocation3 + $0x1], 1 }

</bundles_post_ra>
